<compile_context>
chip_gen: v7x
topology: tpu7x:2x2x1
jax: 0.10.0
libtpu: 0.0.40
codegen_flags: <defaults>
</compile_context>

<pallas_src>
import functools
import math

import jax
import jax.numpy as jnp
from jax.experimental import pallas as pl
from jax.experimental.pallas import tpu as pltpu


_LOG_2PI = math.log(2.0 * math.pi)
_OUT_LANES = 128  # lane-dense packed output width (action | mean | logp | pad)


def _packed_width(act_dim: int) -> int:
    need = 2 * act_dim + 1
    return max(_OUT_LANES, ((need + _OUT_LANES - 1) // _OUT_LANES) * _OUT_LANES)


def _round_up8(n: int) -> int:
    return ((n + 7) // 8) * 8


def _batch_tile(batch: int, n_branches: int) -> int:
    """Batch tile size.

    Big tiles amortize the ~0.35us per-grid-step overhead.  For the
    single-branch path (G=1) with a large batch we force >=2 parallel grid
    steps so both v7x TensorCores get work (the fused path already has the
    branch axis for that).
    """
    cap = 1024
    if n_branches == 1 and batch > 256:
        return min(_round_up8(pl.cdiv(batch, 2)), cap)
    if batch <= cap:
        return batch          # block == full dim (always a legal block shape)
    return cap                # 1024 is a multiple of 8


# ----------------------------- Pallas kernel --------------------------------

def _actor_sample_kernel(x_ref, w1_ref, b1_ref, w2_ref, b2_ref, w3_ref, b3_ref,
                         std_ref, lpc_ref, eps_ref, out_ref, *, act_dim):
    x = x_ref[...]                                              # (TM, obs)

    h1 = jnp.tanh(
        jnp.dot(x, w1_ref[...], preferred_element_type=jnp.float32) + b1_ref[...])
    h2 = jnp.tanh(
        jnp.dot(h1, w2_ref[...], preferred_element_type=jnp.float32) + b2_ref[...])
    mean = (
        jnp.dot(h2, w3_ref[...], preferred_element_type=jnp.float32) + b3_ref[...])

    eps = eps_ref[...]                                          # (TM, act)
    action = mean + std_ref[...] * eps                          # Normal.sample()

    # (action - mean) / std == eps exactly; constant term precomputed on host.
    logp = (-0.5) * jnp.sum(eps * eps, axis=1, keepdims=True) + lpc_ref[...]

    # Single lane-dense, unmasked full-width store:
    # [action | mean | logp | explicit zero pad] along the lanes.
    tm = action.shape[0]
    out_w = out_ref.shape[-1]
    pad = jnp.zeros((tm, out_w - 2 * act_dim - 1), jnp.float32)
    out_ref[...] = jnp.concatenate([action, mean, logp, pad], axis=1)


# ------------------------------ JAX wrapper ----------------------------------

def _actor_sample(x, w1, b1, w2, b2, w3, b3, log_std, eps):
    """Fused actor forward + Normal sampling.

    Params/eps carry a leading "branch" axis G (1 = single branch, 2 = fused
    top+bottom).  x (B, obs) is shared across branches.
    Returns action (G,B,act), mean (G,B,act), logp (G,B).
    """
    G, obs_dim, hid = w1.shape
    act_dim = w3.shape[2]
    B = x.shape[0]
    out_w = _packed_width(act_dim)

    tm = _batch_tile(B, G)
    n_bt = pl.cdiv(B, tm)

    # Tiny host-side precompute: std and the constant part of log_prob.
    std = jnp.exp(log_std)                                       # (G, 1, act)
    logp_const = (jnp.sum(-log_std, axis=-1, keepdims=True)
                  - 0.5 * act_dim * _LOG_2PI)                    # (G, 1, 1)

    kernel = functools.partial(_actor_sample_kernel, act_dim=act_dim)

    flops = 2 * G * B * (obs_dim * hid + hid * hid + hid * act_dim)
    transcendentals = 2 * G * B * hid
    bytes_accessed = 4 * (
        G * (obs_dim * hid + hid * hid + hid * act_dim + 2 * hid + 2 * act_dim + 1)
        + G * B * (obs_dim + act_dim + out_w))

    packed = pl.pallas_call(
        kernel,
        out_shape=jax.ShapeDtypeStruct((G, B, out_w), jnp.float32),
        grid_spec=pltpu.PrefetchScalarGridSpec(
            num_scalar_prefetch=0,
            # Branch axis innermost: on single-TC chips x stays resident across
            # both branches; only the tiny weights re-DMA per inner step.
            # Both axes are "parallel" so v7x shards them across its two cores.
            grid=(n_bt, G),
            in_specs=[
                pl.BlockSpec((tm, obs_dim), lambda i, g: (i, 0)),            # x
                pl.BlockSpec((None, obs_dim, hid), lambda i, g: (g, 0, 0)),  # w1
                pl.BlockSpec((None, 1, hid), lambda i, g: (g, 0, 0)),        # b1
                pl.BlockSpec((None, hid, hid), lambda i, g: (g, 0, 0)),      # w2
                pl.BlockSpec((None, 1, hid), lambda i, g: (g, 0, 0)),        # b2
                pl.BlockSpec((None, hid, act_dim), lambda i, g: (g, 0, 0)),  # w3
                pl.BlockSpec((None, 1, act_dim), lambda i, g: (g, 0, 0)),    # b3
                pl.BlockSpec((None, 1, act_dim), lambda i, g: (g, 0, 0)),    # std
                pl.BlockSpec((None, 1, 1), lambda i, g: (g, 0, 0)),          # logp const
                pl.BlockSpec((None, tm, act_dim), lambda i, g: (g, i, 0)),   # eps
            ],
            out_specs=pl.BlockSpec((None, tm, out_w), lambda i, g: (g, i, 0)),
        ),
        compiler_params=pltpu.CompilerParams(
            dimension_semantics=("parallel", "parallel"),
        ),
        cost_estimate=pl.CostEstimate(
            flops=flops, transcendentals=transcendentals,
            bytes_accessed=bytes_accessed),
    )(x, w1, b1, w2, b2, w3, b3, std, logp_const, eps)

    action = packed[:, :, 0:act_dim]
    mean = packed[:, :, act_dim:2 * act_dim]
    logp = packed[:, :, 2 * act_dim]
    return action, mean, logp


actor_sample = jax.jit(_actor_sample)


# -------------------- SpinalHierarchicalNetwork (forward) --------------------

class Memory:
    def __init__(self):
        self.log_probs_top = []
        self.log_probs_bottom = []


class SpinalHierarchicalNetworkPallas:
    """Forward-pass-only reimplementation of SpinalHierarchicalNetwork."""

    def __init__(self, top_params, bottom_params):
        tmap = jax.tree_util.tree_map
        # Stacked params (branch axis 0: index 0 = top, 1 = bottom) for the
        # fused path, and pre-sliced single-branch views (leading dim 1).
        self.stacked = tmap(lambda a, b: jnp.stack([a, b], axis=0),
                            top_params, bottom_params)
        self.branch = [tmap(lambda a: a[None], top_params),
                       tmap(lambda a: a[None], bottom_params)]

    @staticmethod
    def _run(p, x, eps):
        return actor_sample(x, p["w1"], p["b1"], p["w2"], p["b2"],
                            p["w3"], p["b3"], p["log_std"], eps)

    def forward(self, x, memory, eps, evaluate=False, append=True,
                top=False, bottom=False):
        """Single-branch path; matches the original module's forward API."""
        if not top and not bottom:
            raise RuntimeError("Must be top or bottom")
        idx = 0 if top else 1
        action, mean, logp = self._run(self.branch[idx], x, eps[None])
        action, mean, logp = action[0], mean[0], logp[0]
        if append:
            if top:
                memory.log_probs_top.append(logp)
            else:
                memory.log_probs_bottom.append(logp)
        if evaluate:
            return mean, None
        return action, memory

    def forward_both(self, x, memory, eps_top, eps_bottom,
                     evaluate=False, append=True):
        """Fused path: one pallas_call evaluates top AND bottom actors on x."""
        eps = jnp.stack([eps_top, eps_bottom], axis=0)
        action, mean, logp = self._run(self.stacked, x, eps)
        if append:
            memory.log_probs_top.append(logp[0])
            memory.log_probs_bottom.append(logp[1])
        if evaluate:
            return (mean[0], mean[1]), None
        return (action[0], action[1]), memory


# ------------------------------ parameter init -------------------------------

def _init_actor_params(key, obs_dim, hidden, act_dim):
    ks = jax.random.split(key, 3)

    def lin(kw, fan_in, fan_out):
        bound = 1.0 / jnp.sqrt(jnp.float32(fan_in))
        return jax.random.uniform(kw, (fan_in, fan_out), jnp.float32,
                                  minval=-bound, maxval=bound)

    return {
        "w1": lin(ks[0], obs_dim, hidden),
        "b1": jnp.zeros((1, hidden), jnp.float32),
        "w2": lin(ks[1], hidden, hidden),
        "b2": jnp.zeros((1, hidden), jnp.float32),
        "w3": lin(ks[2], hidden, act_dim),
        "b3": jnp.zeros((1, act_dim), jnp.float32),
        "log_std": jnp.full((1, act_dim), -0.5, jnp.float32),
    }


# ----------------------------------- main ------------------------------------

if __name__ == "__main__":
    B, OBS, HID, ACT = 8, 16, 32, 4

    key = jax.random.PRNGKey(0)
    k_top, k_bot, k_x, k_eps_t, k_eps_b = jax.random.split(key, 5)

    top_params = _init_actor_params(k_top, OBS, HID, ACT)
    bottom_params = _init_actor_params(k_bot, OBS, HID, ACT)

    net = SpinalHierarchicalNetworkPallas(top_params, bottom_params)
    memory = Memory()

    x = jax.random.normal(k_x, (B, OBS), jnp.float32)
    eps_top = jax.random.normal(k_eps_t, (B, ACT), jnp.float32)
    eps_bot = jax.random.normal(k_eps_b, (B, ACT), jnp.float32)

    # Fused path: both actor branches in a single pallas_call.
    (action_top, action_bot), memory = net.forward_both(x, memory,
                                                        eps_top, eps_bot)
    # Single-branch paths (original module API).
    action_top_single, memory = net.forward(x, memory, eps_top,
                                            append=False, top=True)
    mean_top, _ = net.forward(x, memory, eps_top, evaluate=True,
                              append=False, top=True)

    # ---- plain-JAX reference for correctness ----
    def ref_branch(params, eps):
        h1 = jnp.tanh(x @ params["w1"] + params["b1"])
        h2 = jnp.tanh(h1 @ params["w2"] + params["b2"])
        mean = h2 @ params["w3"] + params["b3"]
        std = jnp.exp(params["log_std"])
        action = mean + std * eps
        logp = jnp.sum(-0.5 * ((action - mean) / std) ** 2
                       - params["log_std"] - 0.5 * jnp.log(2.0 * jnp.pi), axis=1)
        return action, mean, logp

    a_ref_t, m_ref_t, lp_ref_t = ref_branch(top_params, eps_top)
    a_ref_b, m_ref_b, lp_ref_b = ref_branch(bottom_params, eps_bot)

    jax.block_until_ready((action_top, action_bot, action_top_single, mean_top,
                           memory.log_probs_top[0], memory.log_probs_bottom[0]))

    ok = lambda a, b: bool(jnp.allclose(a, b, atol=1e-4, rtol=1e-4))
    assert action_top.shape == (B, ACT) and action_bot.shape == (B, ACT)
    assert mean_top.shape == (B, ACT)
    assert memory.log_probs_top[0].shape == (B,)
    assert memory.log_probs_bottom[0].shape == (B,)
    assert ok(action_top, a_ref_t) and ok(action_bot, a_ref_b)
    assert ok(action_top_single, a_ref_t)
    assert ok(mean_top, m_ref_t)
    assert ok(memory.log_probs_top[0], lp_ref_t)
    assert ok(memory.log_probs_bottom[0], lp_ref_b)

    # TODO(synk): learn()/evaluate()/GAE are training-side (PPO update loop with
    # host-side shuffling and an injected optimizer); not part of the forward
    # pass implemented here.
    print("KERNEL_OK")
</pallas_src>

<mosaic_0001>
module attributes {stable_mosaic.version = 11 : i64} {
  func.func @_actor_sample_kernel(%arg0: i32, %arg1: i32, %arg2: memref<8x16xf32, #tpu.memory_space<vmem>>, %arg3: memref<1x16x32xf32, #tpu.memory_space<vmem>>, %arg4: memref<1x1x32xf32, #tpu.memory_space<vmem>>, %arg5: memref<1x32x32xf32, #tpu.memory_space<vmem>>, %arg6: memref<1x1x32xf32, #tpu.memory_space<vmem>>, %arg7: memref<1x32x4xf32, #tpu.memory_space<vmem>>, %arg8: memref<1x1x4xf32, #tpu.memory_space<vmem>>, %arg9: memref<1x1x4xf32, #tpu.memory_space<vmem>>, %arg10: memref<1x1x1xf32, #tpu.memory_space<vmem>>, %arg11: memref<1x8x4xf32, #tpu.memory_space<vmem>>, %arg12: memref<1x8x128xf32, #tpu.memory_space<vmem>>) attributes {dimension_semantics = [#tpu.dimension_semantics<parallel>, #tpu.dimension_semantics<parallel>], iteration_bounds = array<i64: 1, 2>, scalar_prefetch = 0 : i64, scratch_operands = 0 : i64, tpu.core_type = #tpu.core_type<tc>, window_params = [{transform_indices = @transform_0, window_bounds = array<i64: 8, 16>}, {transform_indices = @transform_1, window_bounds = array<i64: 1, 16, 32>}, {transform_indices = @transform_2, window_bounds = array<i64: 1, 1, 32>}, {transform_indices = @transform_3, window_bounds = array<i64: 1, 32, 32>}, {transform_indices = @transform_4, window_bounds = array<i64: 1, 1, 32>}, {transform_indices = @transform_5, window_bounds = array<i64: 1, 32, 4>}, {transform_indices = @transform_6, window_bounds = array<i64: 1, 1, 4>}, {transform_indices = @transform_7, window_bounds = array<i64: 1, 1, 4>}, {transform_indices = @transform_8, window_bounds = array<i64: 1, 1, 1>}, {transform_indices = @transform_9, window_bounds = array<i64: 1, 8, 4>}, {transform_indices = @transform_10, window_bounds = array<i64: 1, 8, 128>}]} {
    %c0 = arith.constant 0 : index
    %c0_0 = arith.constant 0 : index
    %0 = vector.load %arg2[%c0, %c0_0] : memref<8x16xf32, #tpu.memory_space<vmem>>, vector<8x16xf32>
    %c0_1 = arith.constant 0 : index
    %c0_2 = arith.constant 0 : index
    %c0_3 = arith.constant 0 : index
    %1 = vector.load %arg3[%c0_1, %c0_2, %c0_3] : memref<1x16x32xf32, #tpu.memory_space<vmem>>, vector<1x16x32xf32>
    %2 = vector.shape_cast %1 : vector<1x16x32xf32> to vector<16x32xf32>
    %cst = arith.constant dense<0.000000e+00> : vector<8x32xf32>
    %3 = tpu.matmul %0, %2, %cst {dimension_numbers = #tpu.dot_dimension_numbers<[1], [0], [0], [1], [0, 0, 1, 1], [], []>} : vector<8x16xf32>, vector<16x32xf32>, vector<8x32xf32> -> vector<8x32xf32>
    %c0_4 = arith.constant 0 : index
    %c0_5 = arith.constant 0 : index
    %c0_6 = arith.constant 0 : index
    %4 = vector.load %arg4[%c0_4, %c0_5, %c0_6] : memref<1x1x32xf32, #tpu.memory_space<vmem>>, vector<1x1x32xf32>
    %5 = vector.shape_cast %4 : vector<1x1x32xf32> to vector<1x32xf32>
    %6 = vector.broadcast %5 : vector<1x32xf32> to vector<8x32xf32>
    %7 = arith.addf %3, %6 : vector<8x32xf32>
    %8 = math.tanh %7 : vector<8x32xf32>
    %c0_7 = arith.constant 0 : index
    %c0_8 = arith.constant 0 : index
    %c0_9 = arith.constant 0 : index
    %9 = vector.load %arg5[%c0_7, %c0_8, %c0_9] : memref<1x32x32xf32, #tpu.memory_space<vmem>>, vector<1x32x32xf32>
    %10 = vector.shape_cast %9 : vector<1x32x32xf32> to vector<32x32xf32>
    %cst_10 = arith.constant dense<0.000000e+00> : vector<8x32xf32>
    %11 = tpu.matmul %8, %10, %cst_10 {dimension_numbers = #tpu.dot_dimension_numbers<[1], [0], [0], [1], [0, 0, 1, 1], [], []>} : vector<8x32xf32>, vector<32x32xf32>, vector<8x32xf32> -> vector<8x32xf32>
    %c0_11 = arith.constant 0 : index
    %c0_12 = arith.constant 0 : index
    %c0_13 = arith.constant 0 : index
    %12 = vector.load %arg6[%c0_11, %c0_12, %c0_13] : memref<1x1x32xf32, #tpu.memory_space<vmem>>, vector<1x1x32xf32>
    %13 = vector.shape_cast %12 : vector<1x1x32xf32> to vector<1x32xf32>
    %14 = vector.broadcast %13 : vector<1x32xf32> to vector<8x32xf32>
    %15 = arith.addf %11, %14 : vector<8x32xf32>
    %16 = math.tanh %15 : vector<8x32xf32>
    %c0_14 = arith.constant 0 : index
    %c0_15 = arith.constant 0 : index
    %c0_16 = arith.constant 0 : index
    %17 = vector.load %arg7[%c0_14, %c0_15, %c0_16] : memref<1x32x4xf32, #tpu.memory_space<vmem>>, vector<1x32x4xf32>
    %18 = vector.shape_cast %17 : vector<1x32x4xf32> to vector<32x4xf32>
    %cst_17 = arith.constant dense<0.000000e+00> : vector<8x4xf32>
    %19 = tpu.matmul %16, %18, %cst_17 {dimension_numbers = #tpu.dot_dimension_numbers<[1], [0], [0], [1], [0, 0, 1, 1], [], []>} : vector<8x32xf32>, vector<32x4xf32>, vector<8x4xf32> -> vector<8x4xf32>
    %c0_18 = arith.constant 0 : index
    %c0_19 = arith.constant 0 : index
    %c0_20 = arith.constant 0 : index
    %20 = vector.load %arg8[%c0_18, %c0_19, %c0_20] : memref<1x1x4xf32, #tpu.memory_space<vmem>>, vector<1x1x4xf32>
    %21 = vector.shape_cast %20 : vector<1x1x4xf32> to vector<1x4xf32>
    %22 = vector.broadcast %21 : vector<1x4xf32> to vector<8x4xf32>
    %23 = arith.addf %19, %22 : vector<8x4xf32>
    %c0_21 = arith.constant 0 : index
    %c0_22 = arith.constant 0 : index
    %c0_23 = arith.constant 0 : index
    %24 = vector.load %arg11[%c0_21, %c0_22, %c0_23] : memref<1x8x4xf32, #tpu.memory_space<vmem>>, vector<1x8x4xf32>
    %25 = vector.shape_cast %24 : vector<1x8x4xf32> to vector<8x4xf32>
    %c0_24 = arith.constant 0 : index
    %c0_25 = arith.constant 0 : index
    %c0_26 = arith.constant 0 : index
    %26 = vector.load %arg9[%c0_24, %c0_25, %c0_26] : memref<1x1x4xf32, #tpu.memory_space<vmem>>, vector<1x1x4xf32>
    %27 = vector.shape_cast %26 : vector<1x1x4xf32> to vector<1x4xf32>
    %28 = vector.broadcast %27 : vector<1x4xf32> to vector<8x4xf32>
    %29 = arith.mulf %28, %25 : vector<8x4xf32>
    %30 = arith.addf %23, %29 : vector<8x4xf32>
    %31 = arith.mulf %25, %25 : vector<8x4xf32>
    %cst_27 = arith.constant dense<0.000000e+00> : vector<8xf32>
    %32 = vector.multi_reduction <add>, %31, %cst_27 [1] : vector<8x4xf32> to vector<8xf32>
    %33 = vector.shape_cast %32 : vector<8xf32> to vector<8x1xf32>
    %cst_28 = arith.constant -5.000000e-01 : f32
    %34 = vector.broadcast %cst_28 : f32 to vector<8x1xf32>
    %35 = arith.mulf %34, %33 : vector<8x1xf32>
    %c0_29 = arith.constant 0 : index
    %c0_30 = arith.constant 0 : index
    %c0_31 = arith.constant 0 : index
    %36 = vector.load %arg10[%c0_29, %c0_30, %c0_31] : memref<1x1x1xf32, #tpu.memory_space<vmem>>, vector<1x1x1xf32>
    %37 = vector.shape_cast %36 : vector<1x1x1xf32> to vector<1x1xf32>
    %38 = vector.broadcast %37 : vector<1x1xf32> to vector<8x1xf32>
    %39 = arith.addf %35, %38 : vector<8x1xf32>
    %cst_32 = arith.constant 0.000000e+00 : f32
    %40 = vector.broadcast %cst_32 : f32 to vector<8x119xf32>
    %41 = tpu.concatenate %30, %23, %39, %40 in 1 : vector<8x4xf32>, vector<8x4xf32>, vector<8x1xf32>, vector<8x119xf32> -> vector<8x128xf32>
    %c0_33 = arith.constant 0 : index
    %c0_34 = arith.constant 0 : index
    %c0_35 = arith.constant 0 : index
    %42 = vector.load %arg12[%c0_33, %c0_34, %c0_35] : memref<1x8x128xf32, #tpu.memory_space<vmem>>, vector<1x8x128xf32>
    %43 = vector.shape_cast %42 : vector<1x8x128xf32> to vector<8x128xf32>
    %44 = vector.shape_cast %41 : vector<8x128xf32> to vector<1x8x128xf32>
    tpu.vector_store %arg12[%c0_33, %c0_34, %c0_35], %44 {strides = array<i32>} : memref<1x8x128xf32, #tpu.memory_space<vmem>>, vector<1x8x128xf32>,
    return
  }
  func.func @transform_0(%arg0: i32, %arg1: i32) -> (i32, i32) {
    %c0_i32 = arith.constant 0 : i32
    %c0_i32_0 = arith.constant 0 : i32
    return %arg0, %c0_i32 : i32, i32
  }
  func.func @transform_1(%arg0: i32, %arg1: i32) -> (i32, i32, i32) {
    %c0_i32 = arith.constant 0 : i32
    %c0_i32_0 = arith.constant 0 : i32
    %c0_i32_1 = arith.constant 0 : i32
    return %arg1, %c0_i32, %c0_i32_0 : i32, i32, i32
  }
  func.func @transform_2(%arg0: i32, %arg1: i32) -> (i32, i32, i32) {
    %c0_i32 = arith.constant 0 : i32
    %c0_i32_0 = arith.constant 0 : i32
    %c0_i32_1 = arith.constant 0 : i32
    return %arg1, %c0_i32, %c0_i32_0 : i32, i32, i32
  }
  func.func @transform_3(%arg0: i32, %arg1: i32) -> (i32, i32, i32) {
    %c0_i32 = arith.constant 0 : i32
    %c0_i32_0 = arith.constant 0 : i32
    %c0_i32_1 = arith.constant 0 : i32
    return %arg1, %c0_i32, %c0_i32_0 : i32, i32, i32
  }
  func.func @transform_4(%arg0: i32, %arg1: i32) -> (i32, i32, i32) {
    %c0_i32 = arith.constant 0 : i32
    %c0_i32_0 = arith.constant 0 : i32
    %c0_i32_1 = arith.constant 0 : i32
    return %arg1, %c0_i32, %c0_i32_0 : i32, i32, i32
  }
  func.func @transform_5(%arg0: i32, %arg1: i32) -> (i32, i32, i32) {
    %c0_i32 = arith.constant 0 : i32
    %c0_i32_0 = arith.constant 0 : i32
    %c0_i32_1 = arith.constant 0 : i32
    return %arg1, %c0_i32, %c0_i32_0 : i32, i32, i32
  }
  func.func @transform_6(%arg0: i32, %arg1: i32) -> (i32, i32, i32) {
    %c0_i32 = arith.constant 0 : i32
    %c0_i32_0 = arith.constant 0 : i32
    %c0_i32_1 = arith.constant 0 : i32
    return %arg1, %c0_i32, %c0_i32_0 : i32, i32, i32
  }
  func.func @transform_7(%arg0: i32, %arg1: i32) -> (i32, i32, i32) {
    %c0_i32 = arith.constant 0 : i32
    %c0_i32_0 = arith.constant 0 : i32
    %c0_i32_1 = arith.constant 0 : i32
    return %arg1, %c0_i32, %c0_i32_0 : i32, i32, i32
  }
  func.func @transform_8(%arg0: i32, %arg1: i32) -> (i32, i32, i32) {
    %c0_i32 = arith.constant 0 : i32
    %c0_i32_0 = arith.constant 0 : i32
    %c0_i32_1 = arith.constant 0 : i32
    return %arg1, %c0_i32, %c0_i32_0 : i32, i32, i32
  }
  func.func @transform_9(%arg0: i32, %arg1: i32) -> (i32, i32, i32) {
    %c0_i32 = arith.constant 0 : i32
    %c0_i32_0 = arith.constant 0 : i32
    return %arg1, %arg0, %c0_i32 : i32, i32, i32
  }
  func.func @transform_10(%arg0: i32, %arg1: i32) -> (i32, i32, i32) {
    %c0_i32 = arith.constant 0 : i32
    %c0_i32_0 = arith.constant 0 : i32
    return %arg1, %arg0, %c0_i32 : i32, i32, i32
  }
}

</mosaic_0001>

<bundles_post_ra>
// kernel: _actor_sample.1
= control target key start
LH: loop header
LB: loop body
LE: loop exit
PB: predicated region body
PF: predicated region fallthrough
CT: control target
= control target key end

     0   :  { %s1198_s13 = smov 0   ;;  %s1200_s14 = smov 0   ;;  %s1279_s0 = inlined_call_operand.vmem [shape: f32[8,16], index: 0, kind: input, shape index: {}]   ;;  %s1280_s1 = inlined_call_operand.vmem [shape: f32[2,16,32], index: 1, kind: input, shape index: {}]   ;;  %s1281_s2 = inlined_call_operand.vmem [shape: f32[2,1,32], index: 2, kind: input, shape index: {}]   ;;  %s1282_s3 = inlined_call_operand.vmem [shape: f32[2,32,32], index: 3, kind: input, shape index: {}]   ;;  %s1283_s4 = inlined_call_operand.vmem [shape: f32[2,1,32], index: 4, kind: input, shape index: {}]   ;;  %s1284_s5 = inlined_call_operand.vmem [shape: f32[2,32,4], index: 5, kind: input, shape index: {}]   ;;  %s1285_s6 = inlined_call_operand.vmem [shape: f32[2,1,4], index: 6, kind: input, shape index: {}]   ;;  %s1286_s7 = inlined_call_operand.vmem [shape: f32[2,1,4], index: 7, kind: input, shape index: {}]   ;;  %s1287_s8 = inlined_call_operand.vmem [shape: f32[2,1,1], index: 8, kind: input, shape index: {}]   ;;  %s1288_s9 = inlined_call_operand.vmem [shape: f32[2,8,4], index: 9, kind: input, shape index: {}]   ;;  %s1289_s10 = inlined_call_operand.vmem [shape: f32[2,8,128], index: 10, kind: output, shape index: {}]  }
   0x1   :  { %s1202_s15 = smov 0  }
   0x2 LB: > { %s29_s16 = sadd.s32 1, %s1132_s14  ;;  %p1002_p0 = scmp.ge.s32.totalorder %s1136_s15, 1  ;;  %s1136_s15 = sphi %s1202_s15, %s20_s15   ;;  %s1132_s14 = sphi %s1200_s14, %s1291_s14   ;;  %s1128_s13 = sphi %s1198_s13, %s1290_s13  }
   0x3   : > { %p30_p1 = scmp.ge.s32.totalorder %s29_s16, 2  ;;  %p409_p2 = scmp.lt.s32.totalorder %s1136_s15, 3 }
   0x5   : > { %s1293_s16 = smov (%p30_p1, %s29_s16), 0  ;;  %p410_p3 = pnand %p1002_p0, %p409_p2 }
   0x6   : > { %p489_p4 = scmp.lt.s32.totalorder (!%p410_p3), %s1128_s13, 1  ;;  %v1138_v0 = vmov (!%p410_p3), 0.0|0.0   ;;  %vm1139_vm0 = vmmov (!%p410_p3), 0   ;;  %v1140_v1 = vmov (!%p410_p3), 0.0   ;;  %v533_v5 = vld [vmem:[%s1279_s0] sm:$0xff] (!%p410_p3)  ;;  %vm543_vm1 = vcmask (!%p410_p3), 130048  }
   0x7   : > { %413 = sbr.rel (%p410_p3) target bundleno = 806 (0x326), region = 60  ;;  %1066 = vmatprep.subr.bf16.mxu0 (!%p410_p3), %v1138_v0  ;;  %1041 = vmatprep.mubr.msk.f32.mxu0 (!%p410_p3), %vm1139_vm0, %v1140_v1  ;;  %vm629_vm2 = vcmask (!%p410_p3), 261120   ;;  %vm799_vm3 = vcmask (!%p410_p3), 31744   ;;  %s1141_s27 = smov (!%p410_p3), 8   ;;  %vm821_vm4 = vcmask (!%p410_p3), 64512   ;;  %vm823_vm5 = vcmask (!%p410_p3), 72704  }
   0x8   : > { %1069 = vmatprep.subr.bf16.mxu1 (!%p410_p3), %v1138_v0  ;;  %1052 = vmatprep.mubr.msk.f32.mxu1 (!%p410_p3), %vm1139_vm0, %v1140_v1  ;;  %s1142_s19 = smov (!%p410_p3), 4  }
   0xe   : > { %s1295_s13 = smov (!%p489_p4, %s1128_s13), 1 }
   0xf   : > { %s1021_s17 = sshll.u32 %s1295_s13, 4  ;;  %s1022_s23 = sshll.u32 %s1295_s13, 5 }
  0x10   : > { %s493_s20 = scalar_lea.vmem %s1280_s1, %s1021_s17  ;;  %s501_s26 = scalar_lea.vmem %s1282_s3, %s1022_s23 }
  0x11   : > { %v534_v2 = vld [vmem:[%s493_s20] sm:$0xff]  ;;  %v535_v3 = vld [vmem:[%s493_s20 + $0x8] sm:$0xff]  ;;  %v620_v8 = vld [vmem:[%s501_s26 + $0x10] sm:$0xff]  ;;  %s496_s29 = scalar_lea.vmem %s1281_s2, %s1295_s13  ;;  %s509_s12 = scalar_lea.vmem %s1284_s5, %s1022_s23 }
  0x12   : > { %v1067_v4 = vpack.c.bf16 %v535_v3, %v534_v2  ;;  %v618_v6 = vld [vmem:[%s501_s26] sm:$0xff]  ;;  %v619_v7 = vld [vmem:[%s501_s26 + $0x8] sm:$0xff]  ;;  %v621_v10 = vld [vmem:[%s501_s26 + $0x18] sm:$0xff]  ;;  %s1009_s17 = sshll.u32 %s1295_s13, 3  ;;  %s504_s23 = scalar_lea.vmem %s1283_s4, %s1295_s13 }
  0x13   : > { %v1070_v9 = vpack.c.bf16 %v619_v7, %v618_v6  ;;  %v1073_v11 = vpack.c.bf16 %v621_v10, %v620_v8  ;;  %v1011_v12 = vld [vmem:[%s496_s29] ss:$0 sm:$0xff]  ;;  %v705_v18 = vld [vmem:[%s509_s12 + $0x8] sm:$0xff]  ;;  %v706_v19 = vld [vmem:[%s509_s12 + $0x10] sm:$0xff]  ;;  %s525_s20 = scalar_lea.vmem %s1288_s9, %s1009_s17  ;;  %s518_s26 = scalar_lea.vmem %s1287_s8, %s1295_s13 }
  0x14   : > { %1068 = vmatpush3.bf16.msra.mxu0 %v1067_v4  ;;  %v704_v17 = vld [vmem:[%s509_s12] sm:$0xff]  ;;  %v707_v21 = vld [vmem:[%s509_s12 + $0x18] sm:$0xff]  ;;  %s515_s30 = scalar_lea.vmem %s1286_s7, %s1295_s13  ;;  %s512_s18 = scalar_lea.vmem %s1285_s6, %s1295_s13 }
  0x15   : > { %1075 = vmatprep.subr.bf16.mxu0 %v1138_v0  ;;  %1071 = vmatpush3.bf16.msra.mxu1 %v1070_v9  ;;  %v1076_v20 = vpack.c.bf16 %v705_v18, %v704_v17  ;;  %v1079_v22 = vpack.c.bf16 %v707_v21, %v706_v19  ;;  %v788_v23 = vld [vmem:[%s525_s20] sm:$0xff]  ;;  %s532_s22 = scalar_lea.vmem %s1289_s10, %s1009_s17 }
  0x16   : > { %1072 = vmatprep.subr.bf16.mxu1 %v1138_v0  ;;  %v798_v24 = vmul.f32 %v788_v23, %v788_v23  ;;  %v1013_v26 = vld [vmem:[%s504_s23] ss:$0 sm:$0xff] }
  0x17   : > { %1042 = vmatmul.mubr.msk.f32.vlgmr.msra.gmra.mrb[0].mxu0 %vm543_vm1, %v533_v5  ;;  %v1018_v33 = vld [vmem:[%s518_s26] ss:$0 sm:$0xff] }
  0x18   : > { %1063 = vmatprep.mubr.msk.f32.mxu0 %vm1139_vm0, %v1140_v1  ;;  %1077 = vmatpush3.bf16.msra.mxu0 %v1076_v20  ;;  %v800_v25 = vsel %vm799_vm3, %v798_v24, 0.0  ;;  %v1017_v35 = vld [vmem:[%s515_s30] ss:$0 sm:$0xff] }
  0x19   : > { %1074 = vmatpush3.bf16.msra.mxu1 %v1073_v11  ;;  %1078 = vmatprep.subr.bf16.mxu0 %v1138_v0  ;;  %v1015_v36 = vld [vmem:[%s512_s18] ss:$0 sm:$0xff]  ;;  %v796_v37 = vmul.f32 %v1017_v35, %v788_v23 }
  0x1a   : > { %801 = vadd.xlane.f32.xlu0 %v800_v25 }
  0x1c   : > { %1080 = vmatpush3.bf16.msra.mxu0 %v1079_v22 }
  0xa7   : > { %v802_v31 = vpop.xlane.xlu0 %801 }
  0xa8   : > { %v803_v32 = vmul.f32 -0.5, %v802_v31 }
  0xaa   : > { %v811_v34 = vadd.f32 %v1018_v33, %v803_v32 }
  0xac   : > { %817 = vrot.lane.b32.xlu1 %v811_v34, %s1141_s27 }
  0xea   : > { %v613_v13 = vpop.f32.mrb[0].mxu0 }
  0xeb   : > { %v614_v14 = vadd.f32 %v1011_v12, %v613_v13  ;;  %v1043_v15 = vpop.f32.mrb[1].mxu0 }
  0xed   : > { %1110 = vtanh.f32 %v614_v14 }
  0xf7   : > { %v1111_v16 = vpop.eup %1110 }
  0xf8   : > { %1053 = vmatmul.mubr.msk.f32.vlgmr.msra.gmra.mrb[0].mxu1 %vm629_vm2, %v1111_v16 }
 0x11e   : > { %v818_v42 = vpop.permute.xlu1 %817 }
 0x1cb   : > { %v699_v27 = vpop.f32.mrb[0].mxu1 }
 0x1cc   : > { %v700_v28 = vadd.f32 %v1013_v26, %v699_v27  ;;  %v1054_v29 = vpop.f32.mrb[1].mxu1 }
 0x1ce   : > { %1112 = vtanh.f32 %v700_v28 }
 0x1d8   : > { %v1113_v30 = vpop.eup %1112 }
 0x1d9   : > { %1064 = vmatmul.mubr.msk.f32.vlgmr.msra.gmra.mrb[2].mxu0 %vm629_vm2, %v1113_v30 }
 0x2ac   : > { %v784_v38 = vpop.f32.mrb[2].mxu0 }
 0x2ad   : > { %v785_v39 = vadd.f32 %v1015_v36, %v784_v38  ;;  %v1065_v40 = vpop.f32.mrb[3].mxu0 }
 0x2af   : > { %v797_v41 = vadd.f32 %v796_v37, %v785_v39  ;;  %813 = vrot.lane.b32.xlu0 %v785_v39, %s1142_s19 }
 0x321   : > { %v814_v43 = vpop.permute.xlu0 %813 }
 0x322   : > { %v820_v44 = vsel %vm799_vm3, %v797_v41, %v814_v43 }
 0x323   : > { %v822_v45 = vsel %vm821_vm4, %v820_v44, %v818_v42 }
 0x324   : > { %v824_v46 = vsel %vm823_vm5, %v822_v45, 0.0 }
 0x325   : > { %825 = vst [vmem:[%s532_s22] sm:$0xff] %v824_v46 }
 0x326 PF: > { %s20_s15 = sadd.s32 1, %s1136_s15   ;;  %s1290_s13 = smov %s1132_s14 }
 0x327   : > { %p17_p5 = scmp.ge.s32.totalorder %s20_s15, 4   ;;  %s1291_s14 = smov %s1293_s16 }
 0x329   :  { %19 = sbr.rel (!%p17_p5) target bundleno = 2 (0x2), region = 117 }

</bundles_post_ra>
